<compile_context>
chip_gen: v6e
topology: v6e:2x2x1
jax: 0.10.0
libtpu: 0.0.40
codegen_flags: <defaults>
</compile_context>

<pallas_src>
import functools

import jax
import jax.numpy as jnp
from jax.experimental import pallas as pl
from jax.experimental.pallas import tpu as pltpu

_ROW_TILE = 256                  # default sublane tile (multiple of 8)
_MAX_ROW_TILE = 1024             # cap for narrow-column inputs
_COL_TILE = 2048                 # lane tile (multiple of 128)
_MID_TILE = 256                  # channel tile for the middle-axis ('FC' ndim>2) kernel
_TARGET_BLOCK_BYTES = 2 * 1024 * 1024


def _limits(dtype):
    """(lowest, highest) sentinel values used for masked min/max in `dtype`."""
    if jnp.issubdtype(dtype, jnp.floating):
        return jnp.array(-jnp.inf, dtype), jnp.array(jnp.inf, dtype)
    info = jnp.iinfo(dtype)
    return jnp.array(info.min, dtype), jnp.array(info.max, dtype)


def _fold(x, chunk, axis, op):
    """Elementwise-reduce `x` along `axis` down to width `chunk` via static slices.

    Pure VPU work (no cross-lane moves); requires x.shape[axis] % chunk == 0,
    which the callers guarantee by construction.
    """
    size = x.shape[axis]
    if size == chunk:
        return x
    acc = jax.lax.slice_in_dim(x, 0, chunk, axis=axis)
    for i in range(1, size // chunk):
        acc = op(acc, jax.lax.slice_in_dim(x, i * chunk, (i + 1) * chunk, axis=axis))
    return acc


# ---------------------------------------------------------------------------
# per-row min/max:  (R, C) -> partials (S, R, 1)       [q_level 'L', 'C', 'FC' 2-D]
#   grid = (S column-range splits, row blocks, column tiles)   (last axis reduces)
# ---------------------------------------------------------------------------
def _row_minmax_kernel(x_ref, min_ref, max_ref, mn_acc, mx_acc, *,
                       n_cols, col_tile, strip_w, jps, n_col_tiles, mask_cols):
    s = pl.program_id(0)                       # column-range split ("parallel")
    j = pl.program_id(2)                       # reduction axis (last, "arbitrary")
    lo, hi = _limits(x_ref.dtype)

    def accumulate(x_mn, x_mx):
        # lane tree-fold to a narrow strip before touching the accumulator
        smn = _fold(x_mn, strip_w, 1, jnp.minimum)
        smx = _fold(x_mx, strip_w, 1, jnp.maximum)

        @pl.when(j == 0)                        # first tile: overwrite (no sentinel pass)
        def _():
            mn_acc[...] = smn
            mx_acc[...] = smx

        @pl.when(j > 0)
        def _():
            mn_acc[...] = jnp.minimum(mn_acc[...], smn)
            mx_acc[...] = jnp.maximum(mx_acc[...], smx)

    if mask_cols:
        # global tile index, clamped exactly like the input index_map (a clamped
        # "phantom" tile re-reads the last real tile; min/max is idempotent).
        tile = jnp.minimum(s * jps + j, n_col_tiles - 1)
        is_edge = tile == n_col_tiles - 1

        @pl.when(is_edge)                       # only the ragged edge tile pays the mask
        def _():
            x = x_ref[...]
            cols = jax.lax.broadcasted_iota(jnp.int32, x.shape, 1) + tile * col_tile
            valid = cols < n_cols
            accumulate(jnp.where(valid, x, hi), jnp.where(valid, x, lo))

        @pl.when(jnp.logical_not(is_edge))
        def _():
            x = x_ref[...]
            accumulate(x, x)
    else:
        x = x_ref[...]
        accumulate(x, x)

    @pl.when(j == pl.num_programs(2) - 1)
    def _():
        min_ref[...] = jnp.min(mn_acc[...], axis=1, keepdims=True)[None]
        max_ref[...] = jnp.max(mx_acc[...], axis=1, keepdims=True)[None]


def _minmax_rows(x2d):
    """Per-row min/max partials of a 2-D array: returns two (S, R, 1) arrays."""
    r, c = x2d.shape
    itemsize = x2d.dtype.itemsize

    tc = c if c < _COL_TILE else _COL_TILE
    tr = max(_ROW_TILE, _TARGET_BLOCK_BYTES // (tc * itemsize))   # ~2 MiB blocks
    tr = max(8, (min(tr, _MAX_ROW_TILE) // 8) * 8)
    tr = r if r < tr else tr

    n_row_blocks = pl.cdiv(r, tr)
    n_col_tiles = pl.cdiv(c, tc)
    # Column-range split keeps both v7x TensorCores busy when there is only one
    # row block (e.g. 'C' observers with few channels). Harmless on 1-TC chips.
    n_splits = 2 if (n_row_blocks == 1 and n_col_tiles >= 2) else 1
    jps = pl.cdiv(n_col_tiles, n_splits)
    strip_w = 128 if (tc > 128 and tc % 128 == 0) else tc
    mask_cols = (c % tc) != 0
    last_tile = n_col_tiles - 1

    if n_splits == 1:
        in_map = lambda s, i, j: (i, j)
    else:
        in_map = lambda s, i, j: (i, jnp.minimum(s * jps + j, last_tile))

    kernel = functools.partial(
        _row_minmax_kernel, n_cols=c, col_tile=tc, strip_w=strip_w,
        jps=jps, n_col_tiles=n_col_tiles, mask_cols=mask_cols)

    return pl.pallas_call(
        kernel,
        out_shape=(jax.ShapeDtypeStruct((n_splits, r, 1), x2d.dtype),
                   jax.ShapeDtypeStruct((n_splits, r, 1), x2d.dtype)),
        grid_spec=pltpu.PrefetchScalarGridSpec(
            num_scalar_prefetch=0,
            grid=(n_splits, n_row_blocks, jps),
            in_specs=[pl.BlockSpec((tr, tc), in_map)],
            out_specs=(pl.BlockSpec((1, tr, 1), lambda s, i, j: (s, i, 0)),
                       pl.BlockSpec((1, tr, 1), lambda s, i, j: (s, i, 0))),
            scratch_shapes=[pltpu.VMEM((tr, strip_w), x2d.dtype),
                            pltpu.VMEM((tr, strip_w), x2d.dtype)]),
        compiler_params=pltpu.CompilerParams(
            dimension_semantics=("parallel", "parallel", "arbitrary")),
    )(x2d)


# ---------------------------------------------------------------------------
# middle-axis min/max:  (N, C, HW) -> (N, 1, HW)        [q_level 'FC', ndim > 2]
#   reduces dim 1 in the original layout -- no HBM transpose in the wrapper.
# ---------------------------------------------------------------------------
def _mid_minmax_kernel(x_ref, min_ref, max_ref, mn_acc, mx_acc, *,
                       n_mid, mid_tile, strip_h, mask_mid):
    k = pl.program_id(2)                       # channel (reduction) axis, last
    lo, hi = _limits(x_ref.dtype)

    def accumulate(x_mn, x_mx):
        # sublane tree-fold C down to an 8-row strip before touching the accumulator
        smn = _fold(x_mn, strip_h, 1, jnp.minimum)
        smx = _fold(x_mx, strip_h, 1, jnp.maximum)

        @pl.when(k == 0)
        def _():
            mn_acc[...] = smn
            mx_acc[...] = smx

        @pl.when(k > 0)
        def _():
            mn_acc[...] = jnp.minimum(mn_acc[...], smn)
            mx_acc[...] = jnp.maximum(mx_acc[...], smx)

    if mask_mid:
        is_edge = k == pl.num_programs(2) - 1

        @pl.when(is_edge)
        def _():
            x = x_ref[...]
            mids = jax.lax.broadcasted_iota(jnp.int32, x.shape, 1) + k * mid_tile
            valid = mids < n_mid
            accumulate(jnp.where(valid, x, hi), jnp.where(valid, x, lo))

        @pl.when(jnp.logical_not(is_edge))
        def _():
            x = x_ref[...]
            accumulate(x, x)
    else:
        x = x_ref[...]
        accumulate(x, x)

    @pl.when(k == pl.num_programs(2) - 1)
    def _():
        min_ref[...] = jnp.min(mn_acc[...], axis=1, keepdims=True)
        max_ref[...] = jnp.max(mx_acc[...], axis=1, keepdims=True)


def _minmax_mid(x3d):
    n, c, hw = x3d.shape
    itemsize = x3d.dtype.itemsize

    tcm = c if c < _MID_TILE else _MID_TILE
    thw_cap = _TARGET_BLOCK_BYTES // max(1, tcm * itemsize)
    thw_cap = max(_COL_TILE, min(8192, (thw_cap // 128) * 128))
    thw = hw if hw < thw_cap else thw_cap

    n_hw_tiles = pl.cdiv(hw, thw)
    n_c_tiles = pl.cdiv(c, tcm)
    strip_h = 8 if (tcm > 8 and tcm % 8 == 0) else tcm
    mask_mid = (c % tcm) != 0       # ragged lanes (HW) only feed dropped OOB outputs

    kernel = functools.partial(
        _mid_minmax_kernel, n_mid=c, mid_tile=tcm, strip_h=strip_h, mask_mid=mask_mid)

    return pl.pallas_call(
        kernel,
        out_shape=(jax.ShapeDtypeStruct((n, 1, hw), x3d.dtype),
                   jax.ShapeDtypeStruct((n, 1, hw), x3d.dtype)),
        grid_spec=pltpu.PrefetchScalarGridSpec(
            num_scalar_prefetch=0,
            grid=(n, n_hw_tiles, n_c_tiles),
            in_specs=[pl.BlockSpec((1, tcm, thw), lambda b, j, k: (b, k, j))],
            out_specs=(pl.BlockSpec((1, 1, thw), lambda b, j, k: (b, 0, j)),
                       pl.BlockSpec((1, 1, thw), lambda b, j, k: (b, 0, j))),
            scratch_shapes=[pltpu.VMEM((1, strip_h, thw), x3d.dtype),
                            pltpu.VMEM((1, strip_h, thw), x3d.dtype)]),
        compiler_params=pltpu.CompilerParams(
            dimension_semantics=("parallel", "parallel", "arbitrary")),
    )(x3d)


# ---------------------------------------------------------------------------
# wrapper helpers
# ---------------------------------------------------------------------------
def _as_2d_for_global(x):
    """Lane-friendly 2-D view for the global ('L') reduction (pure reshape, no
    HBM data movement for contiguous inputs)."""
    s = int(x.size)
    lane_aligned = [c for c in range(128, _COL_TILE + 1, 128) if s % c == 0]
    if lane_aligned:
        tall = [c for c in lane_aligned if s // c >= 8]     # prefer >= 8 sublane rows
        cols = max(tall) if tall else max(lane_aligned)
        return x.reshape(s // cols, cols)
    # not 128-factorable: widest divisor keeps multiple sublanes per vreg anyway
    for cols in range(min(s, _COL_TILE), 7, -1):
        if s % cols == 0:
            return x.reshape(s // cols, cols)
    # TODO(synk): prime-ish element counts fall back to a single-row view
    return x.reshape(1, s)


# ---------------------------------------------------------------------------
# public wrapper: ObserverBase.forward's min/max computation
# ---------------------------------------------------------------------------
def observer_minmax(x, q_level):
    """Returns (min_val, max_val) with the same shapes PyTorch produces."""
    if q_level == 'L':
        mn_p, mx_p = _minmax_rows(_as_2d_for_global(x))
        return jnp.min(mn_p), jnp.max(mx_p)                       # scalars
    if q_level == 'C':
        v = x.reshape(x.shape[0], -1)            # torch.flatten(input, start_dim=1)
        mn_p, mx_p = _minmax_rows(v)
        return jnp.min(mn_p, axis=(0, 2)), jnp.max(mx_p, axis=(0, 2))     # (N,)
    if q_level == 'FC':
        if x.ndim == 2:
            mn_p, mx_p = _minmax_rows(x)
            return jnp.min(mn_p, axis=0), jnp.max(mx_p, axis=0)   # (N, 1) keepdim
        # ndim > 2: reduce the middle (dim-1) axis in-kernel -- no HBM transpose.
        n, c = x.shape[0], x.shape[1]
        spatial = x.shape[2:]
        hw = 1
        for d in spatial:
            hw *= d
        mn3, mx3 = _minmax_mid(x.reshape(n, c, hw))
        return mn3.reshape((n, 1) + spatial), mx3.reshape((n, 1) + spatial)
    raise ValueError(f"unknown q_level: {q_level!r}")


# ---------------------------------------------------------------------------
# pure-JAX reference for correctness checking
# ---------------------------------------------------------------------------
def observer_reference(x, q_level):
    if q_level == 'L':
        return jnp.min(x), jnp.max(x)
    if q_level == 'C':
        v = x.reshape(x.shape[0], -1)
        return jnp.min(v, axis=1), jnp.max(v, axis=1)
    if q_level == 'FC':
        return (jnp.min(x, axis=1, keepdims=True),
                jnp.max(x, axis=1, keepdims=True))
    raise ValueError(q_level)


if __name__ == "__main__":
    key = jax.random.PRNGKey(0)
    keys = jax.random.split(key, 6)

    x4 = jax.random.normal(keys[0], (2, 4, 16, 16), jnp.float32)   # conv activations
    x2 = jax.random.normal(keys[1], (8, 32), jnp.float32)          # FC activations

    cases = [
        ("L", x4),
        ("C", x4),
        ("FC", x2),
        ("FC", x4),
        # extra shapes exercising ragged edges, the column-range split, multi
        # row blocks, the middle-axis kernel's channel mask, and the non-128
        # factorization fallback for 'L'.
        ("C", jax.random.normal(keys[2], (4, 5000), jnp.float32)),
        ("L", jax.random.normal(keys[3], (2, 4, 128, 513), jnp.float32)),
        ("FC", jax.random.normal(keys[4], (2, 300, 520), jnp.float32)),
        ("L", jax.random.normal(keys[5], (7, 3333), jnp.float32)),
    ]
    for q_level, x in cases:
        mn, mx = jax.block_until_ready(observer_minmax(x, q_level))
        rmn, rmx = observer_reference(x, q_level)
        assert mn.shape == rmn.shape and mx.shape == rmx.shape, \
            (q_level, x.shape, mn.shape, rmn.shape, mx.shape, rmx.shape)
        assert jnp.allclose(mn, rmn) and jnp.allclose(mx, rmx), \
            (q_level, x.shape,
             float(jnp.max(jnp.abs(mn - rmn))),
             float(jnp.max(jnp.abs(mx - rmx))))

    print("KERNEL_OK")
</pallas_src>

<mosaic_0001>
module attributes {stable_mosaic.version = 11 : i64} {
  func.func @_row_minmax_kernel(%arg0: i32, %arg1: i32, %arg2: i32, %arg3: memref<8x256xf32, #tpu.memory_space<vmem>>, %arg4: memref<1x8x1xf32, #tpu.memory_space<vmem>>, %arg5: memref<1x8x1xf32, #tpu.memory_space<vmem>>, %arg6: memref<8x128xf32, #tpu.memory_space<vmem>>, %arg7: memref<8x128xf32, #tpu.memory_space<vmem>>) attributes {dimension_semantics = [#tpu.dimension_semantics<parallel>, #tpu.dimension_semantics<parallel>, #tpu.dimension_semantics<arbitrary>], iteration_bounds = array<i64: 1, 1, 1>, scalar_prefetch = 0 : i64, scratch_operands = 2 : i64, tpu.core_type = #tpu.core_type<tc>, window_params = [{transform_indices = @transform_0, window_bounds = array<i64: 8, 256>}, {transform_indices = @transform_1, window_bounds = array<i64: 1, 8, 1>}, {transform_indices = @transform_2, window_bounds = array<i64: 1, 8, 1>}]} {
    %c0 = arith.constant 0 : index
    %c0_0 = arith.constant 0 : index
    %0 = vector.load %arg3[%c0, %c0_0] : memref<8x256xf32, #tpu.memory_space<vmem>>, vector<8x256xf32>
    %1 = vector.extract_strided_slice %0 {offsets = [0, 0], sizes = [8, 128], strides = [1, 1]} : vector<8x256xf32> to vector<8x128xf32>
    %2 = vector.extract_strided_slice %0 {offsets = [0, 128], sizes = [8, 128], strides = [1, 1]} : vector<8x256xf32> to vector<8x128xf32>
    %3 = arith.minimumf %1, %2 : vector<8x128xf32>
    %4 = vector.extract_strided_slice %0 {offsets = [0, 0], sizes = [8, 128], strides = [1, 1]} : vector<8x256xf32> to vector<8x128xf32>
    %5 = vector.extract_strided_slice %0 {offsets = [0, 128], sizes = [8, 128], strides = [1, 1]} : vector<8x256xf32> to vector<8x128xf32>
    %6 = arith.maximumf %4, %5 : vector<8x128xf32>
    %c0_i32 = arith.constant 0 : i32
    %7 = arith.cmpi eq, %arg2, %c0_i32 : i32
    %8 = arith.extui %7 : i1 to i32
    %c0_i32_1 = arith.constant 0 : i32
    %9 = arith.cmpi ne, %8, %c0_i32_1 : i32
    scf.if %9 {
      %c0_6 = arith.constant 0 : index
      %c0_7 = arith.constant 0 : index
      %16 = vector.load %arg6[%c0_6, %c0_7] : memref<8x128xf32, #tpu.memory_space<vmem>>, vector<8x128xf32>
      tpu.vector_store %arg6[%c0_6, %c0_7], %3 {strides = array<i32>} : memref<8x128xf32, #tpu.memory_space<vmem>>, vector<8x128xf32>,
      %c0_8 = arith.constant 0 : index
      %c0_9 = arith.constant 0 : index
      %17 = vector.load %arg7[%c0_8, %c0_9] : memref<8x128xf32, #tpu.memory_space<vmem>>, vector<8x128xf32>
      tpu.vector_store %arg7[%c0_8, %c0_9], %6 {strides = array<i32>} : memref<8x128xf32, #tpu.memory_space<vmem>>, vector<8x128xf32>,
    } else {
    }
    %c0_i32_2 = arith.constant 0 : i32
    %10 = arith.cmpi sgt, %arg2, %c0_i32_2 : i32
    %11 = arith.extui %10 : i1 to i32
    %c0_i32_3 = arith.constant 0 : i32
    %12 = arith.cmpi ne, %11, %c0_i32_3 : i32
    scf.if %12 {
      %c0_6 = arith.constant 0 : index
      %c0_7 = arith.constant 0 : index
      %16 = vector.load %arg6[%c0_6, %c0_7] : memref<8x128xf32, #tpu.memory_space<vmem>>, vector<8x128xf32>
      %17 = arith.minimumf %16, %3 : vector<8x128xf32>
      %c0_8 = arith.constant 0 : index
      %c0_9 = arith.constant 0 : index
      %18 = vector.load %arg6[%c0_8, %c0_9] : memref<8x128xf32, #tpu.memory_space<vmem>>, vector<8x128xf32>
      tpu.vector_store %arg6[%c0_8, %c0_9], %17 {strides = array<i32>} : memref<8x128xf32, #tpu.memory_space<vmem>>, vector<8x128xf32>,
      %c0_10 = arith.constant 0 : index
      %c0_11 = arith.constant 0 : index
      %19 = vector.load %arg7[%c0_10, %c0_11] : memref<8x128xf32, #tpu.memory_space<vmem>>, vector<8x128xf32>
      %20 = arith.maximumf %19, %6 : vector<8x128xf32>
      %c0_12 = arith.constant 0 : index
      %c0_13 = arith.constant 0 : index
      %21 = vector.load %arg7[%c0_12, %c0_13] : memref<8x128xf32, #tpu.memory_space<vmem>>, vector<8x128xf32>
      tpu.vector_store %arg7[%c0_12, %c0_13], %20 {strides = array<i32>} : memref<8x128xf32, #tpu.memory_space<vmem>>, vector<8x128xf32>,
    } else {
    }
    %c0_i32_4 = arith.constant 0 : i32
    %13 = arith.cmpi eq, %arg2, %c0_i32_4 : i32
    %14 = arith.extui %13 : i1 to i32
    %c0_i32_5 = arith.constant 0 : i32
    %15 = arith.cmpi ne, %14, %c0_i32_5 : i32
    scf.if %15 {
      %c0_6 = arith.constant 0 : index
      %c0_7 = arith.constant 0 : index
      %16 = vector.load %arg6[%c0_6, %c0_7] : memref<8x128xf32, #tpu.memory_space<vmem>>, vector<8x128xf32>
      %cst = arith.constant dense<0x7F800000> : vector<8xf32>
      %17 = vector.multi_reduction <minimumf>, %16, %cst [1] : vector<8x128xf32> to vector<8xf32>
      %18 = vector.shape_cast %17 : vector<8xf32> to vector<8x1xf32>
      %19 = vector.shape_cast %18 : vector<8x1xf32> to vector<1x8x1xf32>
      %c0_8 = arith.constant 0 : index
      %c0_9 = arith.constant 0 : index
      %c0_10 = arith.constant 0 : index
      %20 = vector.load %arg4[%c0_8, %c0_9, %c0_10] : memref<1x8x1xf32, #tpu.memory_space<vmem>>, vector<1x8x1xf32>
      tpu.vector_store %arg4[%c0_8, %c0_9, %c0_10], %19 {strides = array<i32>} : memref<1x8x1xf32, #tpu.memory_space<vmem>>, vector<1x8x1xf32>,
      %c0_11 = arith.constant 0 : index
      %c0_12 = arith.constant 0 : index
      %21 = vector.load %arg7[%c0_11, %c0_12] : memref<8x128xf32, #tpu.memory_space<vmem>>, vector<8x128xf32>
      %cst_13 = arith.constant dense<0xFF800000> : vector<8xf32>
      %22 = vector.multi_reduction <maximumf>, %21, %cst_13 [1] : vector<8x128xf32> to vector<8xf32>
      %23 = vector.shape_cast %22 : vector<8xf32> to vector<8x1xf32>
      %24 = vector.shape_cast %23 : vector<8x1xf32> to vector<1x8x1xf32>
      %c0_14 = arith.constant 0 : index
      %c0_15 = arith.constant 0 : index
      %c0_16 = arith.constant 0 : index
      %25 = vector.load %arg5[%c0_14, %c0_15, %c0_16] : memref<1x8x1xf32, #tpu.memory_space<vmem>>, vector<1x8x1xf32>
      tpu.vector_store %arg5[%c0_14, %c0_15, %c0_16], %24 {strides = array<i32>} : memref<1x8x1xf32, #tpu.memory_space<vmem>>, vector<1x8x1xf32>,
    } else {
    }
    return
  }
  func.func @transform_0(%arg0: i32, %arg1: i32, %arg2: i32) -> (i32, i32) {
    %c0_i32 = arith.constant 0 : i32
    return %arg1, %arg2 : i32, i32
  }
  func.func @transform_1(%arg0: i32, %arg1: i32, %arg2: i32) -> (i32, i32, i32) {
    %c0_i32 = arith.constant 0 : i32
    %c0_i32_0 = arith.constant 0 : i32
    return %arg0, %arg1, %c0_i32 : i32, i32, i32
  }
  func.func @transform_2(%arg0: i32, %arg1: i32, %arg2: i32) -> (i32, i32, i32) {
    %c0_i32 = arith.constant 0 : i32
    %c0_i32_0 = arith.constant 0 : i32
    return %arg0, %arg1, %c0_i32 : i32, i32, i32
  }
}

</mosaic_0001>

<bundles_post_ra>
// kernel: tpu_custom_call.1
= control target key start
LH: loop header
LB: loop body
LE: loop exit
PB: predicated region body
PF: predicated region fallthrough
CT: control target
= control target key end

     0   :  { %8 = vsyncpa [#allocation5], 0  ;;  %s86_s9 = smov [#allocation4]   ;;  %s111_s0 = inlined_call_operand.hbm [shape: f32[8,256], index: 0, kind: input, shape index: {}]   ;;  %s112_s1 = inlined_call_operand.vmem [shape: f32[1,8,1], index: 1, kind: output, shape index: {0}]   ;;  %s113_s2 = inlined_call_operand.vmem [shape: f32[1,8,1], index: 2, kind: output, shape index: {1}]  }
   0x1   :  { %s15_s10 = sshll.u32 %s86_s9, 4  ;;  %s16_s10 = int_to_ptr.vmem [resolvable:$true] %s15_s10 }
   0x2   :  { %s72_s11 = scalar_lea.vmem %s16_s10, 256  ;;  %p77_p1 = scmp.lt.s32.totalorder %s16_s10, %s16_s10 }
   0x3   :  { %p73_p0 = scmp.ne.s32.totalorder %s16_s10, %s72_s11  ;;  %p78_p2 = scmp.lt.s32.totalorder %s72_s11, %s72_s11 }
   0x5   :  { %p79_p3 = por %p78_p2, %p77_p1 }
   0x7   :  { %p80_p4 = pnand %p79_p3, %p73_p0 }
   0x9   :  { %83 = shalt.err (!%p80_p4)
}
   0xa   :  { %18 = dma.hbm_to_vmem [thread:$0]  %s111_s0, 256, %s16_s10, [#allocation5]  }
   0xb   :  { %84 = dma.done.wait [#allocation5], 256  }
   0xc   :  { %85 = vsyncadd [#allocation5], 4294967040  ;;  %v22_v0 = vld [vmem:[#allocation4] sm:$0xff]  ;;  %v23_v1 = vld [vmem:[#allocation4 + $0x8] sm:$0xff]  ;;  %vm48_vm0 = vcmask 7168  }
   0xd   :  { %v24_v2 = vmin.f32 %v22_v0, %v23_v1  ;;  %v25_v3 = vmax.f32 %v22_v0, %v23_v1 }
   0xf   :  { %46 = vmin.xlane.f32.xlu0 %v24_v2 }
  0x13   :  { %51 = vmax.xlane.f32.xlu0 %v25_v3 }
  0x98   :  { %v47_v4 = vpop.xlane.xlu0 %46 }
  0x99   :  { %49 = vst.msk [vmem:[%s112_s1] sm:$0xff] %vm48_vm0, %v47_v4 }
  0x9c   :  { %v52_v5 = vpop.xlane.xlu0 %51 }
  0x9d   :  { %53 = vst.msk [vmem:[%s113_s2] sm:$0xff] %vm48_vm0, %v52_v5 }
  0x9e   :  { %62 = vsyncpa [#allocation5], 1 }

</bundles_post_ra>
